<compile_context>
chip_gen: v6e
topology: v6e:2x2x1
jax: 0.10.0
libtpu: 0.0.40
codegen_flags: <defaults>
</compile_context>

<pallas_src>
import functools

import jax
import jax.numpy as jnp
from jax.experimental import pallas as pl
from jax.experimental.pallas import tpu as pltpu


def _satlu_kernel(x_ref, o_ref, *, lower, upper):
    # Two VPU ops per element; scalar immediates -> no broadcast materialization.
    o_ref[...] = jnp.minimum(jnp.maximum(x_ref[...], lower), upper)


def _tpu_block_config():
    """Per-generation (target_block_bytes, vmem_limit_bytes_or_None)."""
    try:
        kind = jax.devices()[0].device_kind.lower()
    except Exception:  # pragma: no cover - defensive (interpret mode, etc.)
        kind = ""
    if "v7" in kind or "tpu7" in kind:
        # v7x: ~3.2 TB/s HBM, 64 MiB physical VMEM/TC but 32 MiB scoped default.
        # 8 MiB blocks double-buffered in+out ~= 32 MiB -> raise the scoped limit.
        return 8 << 20, 48 << 20
    if "v6" in kind:
        # v6e: ~1.4 TB/s. 4 MiB blocks -> 16 MiB double-buffered, fits 32 MiB default.
        return 4 << 20, None
    # v5e (and unknown/conservative): ~0.8 TB/s. 2 MiB blocks -> 8 MiB, fits 16 MiB.
    return 2 << 20, None


def satlu(x, lower=0.0, upper=255.0, *, min_pallas_bytes=2 << 20, inplace=False):
    """Saturating linear unit: clamp(x, lower, upper). Any shape, same dtype out."""
    orig_shape = x.shape
    dtype = x.dtype
    n = x.size
    itemsize = jnp.dtype(dtype).itemsize

    if n == 0:
        return x

    # Clamp bounds to the dtype's representable range and bind them as Python
    # scalars (weakly typed -> no dtype promotion inside the kernel).
    if jnp.issubdtype(dtype, jnp.floating):
        lo, hi = float(lower), float(upper)
    elif jnp.issubdtype(dtype, jnp.integer):
        info = jnp.iinfo(dtype)
        lo = int(max(int(lower), int(info.min)))
        hi = int(min(int(upper), int(info.max)))
    else:
        # Exotic dtypes: let XLA handle it.
        return jnp.clip(x, lower, upper)

    # Fast paths where a standalone Pallas launch cannot win:
    #  * small/mid tensors: launch overhead + forced HBM round trip beat any gain
    #    (XLA fuses the clip into producer/consumer ops instead);
    #  * ragged total size (n % 128 != 0): padding + post-slice would roughly
    #    double HBM traffic, so the plain fused clip is strictly better.
    if n * itemsize < min_pallas_bytes or n % 128 != 0:
        return jnp.clip(x, lo, hi)

    # Widest lane-dense column width that divides n (no pad needed on this path).
    cols = 1024
    while n % cols != 0:
        cols //= 2  # terminates at 128 because n % 128 == 0 here
    rows = n // cols
    x2d = jnp.ravel(x).reshape(rows, cols)

    # Per-generation block sizing for the HBM-bound stream.
    target_block_bytes, vmem_limit = _tpu_block_config()
    sub = max(8, 32 // itemsize)  # sublane multiple: f32 -> 8, bf16 -> 16, int8 -> 32
    block_rows = max(sub, (target_block_bytes // (cols * itemsize)) // sub * sub)

    # Guarantee a multi-step grid (>= ~4 steps) so the input/output DMA pipeline
    # overlaps with compute and v7x's second TensorCore gets work. The last grid
    # block may be ragged; Pallas masks it.
    if rows <= sub:
        tile_rows = rows  # full extent (tiny input forced through the kernel)
    else:
        cap = max(sub, (pl.cdiv(rows, 4) // sub) * sub)
        tile_rows = min(block_rows, cap)
    grid = (pl.cdiv(rows, tile_rows),)

    call_kwargs = dict(
        out_shape=jax.ShapeDtypeStruct((rows, cols), dtype),
        grid=grid,
        in_specs=[pl.BlockSpec((tile_rows, cols), lambda i: (i, 0))],
        out_specs=pl.BlockSpec((tile_rows, cols), lambda i: (i, 0)),
        compiler_params=pltpu.CompilerParams(
            dimension_semantics=("parallel",),  # shard grid across v7x's two TCs
            vmem_limit_bytes=vmem_limit,
        ),
        cost_estimate=pl.CostEstimate(
            flops=2 * n,
            bytes_accessed=2 * n * itemsize,
            transcendentals=0,
        ),
    )
    if inplace:
        # Mirrors the module's `inplace` flag: clamp in place when the caller
        # donates the input buffer (avoids the extra output allocation).
        call_kwargs["input_output_aliases"] = {0: 0}

    out2d = pl.pallas_call(
        functools.partial(_satlu_kernel, lower=lo, upper=hi), **call_kwargs
    )(x2d)
    return out2d.reshape(orig_shape)


if __name__ == "__main__":
    key = jax.random.PRNGKey(0)
    k1, k2, k3, k4 = jax.random.split(key, 4)

    # 1) Module-scale NCHW input (small -> fused jnp.clip fast path).
    x = jax.random.uniform(k1, (2, 4, 16, 16), jnp.float32, minval=-100.0, maxval=400.0)
    out = jax.block_until_ready(satlu(x, lower=0.0, upper=255.0))
    assert out.shape == x.shape and out.dtype == x.dtype
    assert jnp.allclose(out, jnp.clip(x, 0.0, 255.0))

    # 2) Force the Pallas path on a modest lane-dense input (multi-step grid,
    #    no padding: 2*4*128*256 elements divide cleanly into 1024 lanes).
    x_big = jax.random.uniform(
        k2, (2, 4, 128, 256), jnp.float32, minval=-100.0, maxval=400.0
    )
    out_big = jax.block_until_ready(satlu(x_big, lower=0.0, upper=255.0, min_pallas_bytes=0))
    assert out_big.shape == x_big.shape and out_big.dtype == x_big.dtype
    assert jnp.allclose(out_big, jnp.clip(x_big, 0.0, 255.0))

    # 3) Ragged total size -> clean fallback (no pad/slice HBM round trip).
    x_odd = jax.random.uniform(k3, (1, 3, 10, 13), jnp.float32, minval=-100.0, maxval=400.0)
    out_odd = jax.block_until_ready(satlu(x_odd, lower=0.0, upper=255.0, min_pallas_bytes=0))
    assert out_odd.shape == x_odd.shape and out_odd.dtype == x_odd.dtype
    assert jnp.allclose(out_odd, jnp.clip(x_odd, 0.0, 255.0))

    # 4) Integer dtype: bounds are clamped to the dtype range (int8 upper -> 127).
    x_int = jax.random.randint(k4, (2, 4, 16, 16), -128, 128, dtype=jnp.int8)
    out_int = jax.block_until_ready(satlu(x_int, lower=0, upper=255))
    assert out_int.dtype == x_int.dtype
    assert jnp.array_equal(out_int, jnp.clip(x_int, 0, 127))

    print("KERNEL_OK")
</pallas_src>

<mosaic_0001>
module attributes {stable_mosaic.version = 11 : i64} {
  func.func @_satlu_kernel(%arg0: i32, %arg1: memref<64x1024xf32, #tpu.memory_space<vmem>>, %arg2: memref<64x1024xf32, #tpu.memory_space<vmem>>) attributes {dimension_semantics = [#tpu.dimension_semantics<parallel>], iteration_bounds = array<i64: 4>, scalar_prefetch = 0 : i64, scratch_operands = 0 : i64, tpu.core_type = #tpu.core_type<tc>, window_params = [{transform_indices = @transform_0, window_bounds = array<i64: 64, 1024>}, {transform_indices = @transform_1, window_bounds = array<i64: 64, 1024>}]} {
    %c0 = arith.constant 0 : index
    %c0_0 = arith.constant 0 : index
    %0 = vector.load %arg1[%c0, %c0_0] : memref<64x1024xf32, #tpu.memory_space<vmem>>, vector<64x1024xf32>
    %cst = arith.constant 0.000000e+00 : f32
    %1 = vector.broadcast %cst : f32 to vector<64x1024xf32>
    %2 = arith.maximumf %0, %1 : vector<64x1024xf32>
    %cst_1 = arith.constant 2.550000e+02 : f32
    %3 = vector.broadcast %cst_1 : f32 to vector<64x1024xf32>
    %4 = arith.minimumf %2, %3 : vector<64x1024xf32>
    %c0_2 = arith.constant 0 : index
    %c0_3 = arith.constant 0 : index
    %5 = vector.load %arg2[%c0_2, %c0_3] : memref<64x1024xf32, #tpu.memory_space<vmem>>, vector<64x1024xf32>
    tpu.vector_store %arg2[%c0_2, %c0_3], %4 {strides = array<i32>} : memref<64x1024xf32, #tpu.memory_space<vmem>>, vector<64x1024xf32>,
    return
  }
  func.func @transform_0(%arg0: i32) -> (i32, i32) {
    %c0_i32 = arith.constant 0 : i32
    %c0_i32_0 = arith.constant 0 : i32
    return %arg0, %c0_i32 : i32, i32
  }
  func.func @transform_1(%arg0: i32) -> (i32, i32) {
    %c0_i32 = arith.constant 0 : i32
    %c0_i32_0 = arith.constant 0 : i32
    return %arg0, %c0_i32 : i32, i32
  }
}

</mosaic_0001>

<bundles_post_ra>
// kernel: tpu_custom_call.1
= control target key start
LH: loop header
LB: loop body
LE: loop exit
PB: predicated region body
PF: predicated region fallthrough
CT: control target
= control target key end

     0   :  { %6 = vsyncpa [#allocation3], 0  ;;  %s953_s0 = inlined_call_operand.hbm [shape: f32[256,1024], index: 0, kind: input, shape index: {}]   ;;  %s954_s1 = inlined_call_operand.hbm [shape: f32[256,1024], index: 1, kind: output, shape index: {}]  }
   0x1   :  { %8 = vsyncpa [#allocation3 + $0x1], 0 }
   0x2   :  { %9 = vsyncpa [#allocation4], 0 }
   0x3   :  { %11 = vsyncpa [#allocation4 + $0x1], 0  ;;  %s662_s6 = smov 0   ;;  %s664_s7 = smov 0  }
   0x4   :  { %s666_s8 = smov 0   ;;  %s668_s9 = smov 0  }
   0x5 LB: > { %s683_s10 = sadd.s32 4294967295, %s644_s9   ;;  %s482_s11 = sadd.s32 4294967294, %s644_s9   ;;  %s644_s9 = sphi %s668_s9, %s968_s9   ;;  %s640_s8 = sphi %s666_s8, %s967_s8   ;;  %s636_s7 = sphi %s664_s7, %s966_s7   ;;  %s632_s6 = sphi %s662_s6, %s965_s6  }
   0x6   : > { %s687_s12 = sadd.s32 1, %s644_s9   ;;  %s24_s13 = sadd.s32 1, %s640_s8 }
   0x7   : > { %s21_s14 = ssub.s32 %s644_s9, %s687_s12  ;;  %p31_p0 = scmp.ne.s32.totalorder %s640_s8, %s636_s7 }
   0x8   : > { %p22_p1 = scmp.eq.s32.totalorder %s21_s14, 0  ;;  %p32_p2 = scmp.eq.s32.totalorder %s644_s9, 0 }
   0x9   : > { %p37_p3 = scmp.ne.s32.totalorder %s636_s7, %s632_s6  ;;  %p38_p4 = scmp.eq.s32.totalorder %s683_s10, 0 }
   0xa   : > { %s699_s15 = scalar_select %p22_p1, %s640_s8, %s24_s13  }
   0xb   : > { %p701_p5 = por %p32_p2, %p31_p0  ;;  %p705_p6 = por %p38_p4, %p37_p3 }
   0xc   : > { %p61_p7 = scmp.eq.s32.totalorder %s683_s10, 3  ;;  %p67_p8 = scmp.eq.s32.totalorder %s482_s11, 3 }
   0xd   : > { %s958_s17 = scalar_select %p705_p6, 1, 0 }
   0xe   : > { %p514_p9 = scmp.lt.s32.totalorder %s644_s9, 4  ;;  %p711_p10 = por %p61_p7, %p31_p0 }
   0xf   : > { %p715_p11 = por %p67_p8, %p37_p3  ;;  %s87_s20 = sand.u32 1, %s640_s8  }
  0x10   : > { %s959_s18 = scalar_select %p711_p10, 1, 0 }
  0x11   : > { %s960_s19 = scalar_select %p715_p11, 1, 0 }
  0x12   : > { %s499_s21 = sshll.u32 %s644_s9, 13  ;;  %s485_s22 = sshll.u32 %s87_s20, 9 }
  0x13   : > { %s724_s25 = scalar_lea.hbm %s953_s0, %s499_s21  ;;  %s91_s26 = scalar_lea.vmem [#allocation2], %s485_s22 }
  0x14   : > { %s99_s27 = sshll.u32 %s91_s26, 4  ;;  %p728_p12 = pnand %p514_p9, %p701_p5  ;;  %s732_s27 = int_to_ptr.vmem [resolvable:$true] %s99_s27 }
  0x15   : > { %s734_s29 = scalar_lea.sflag [#allocation3], %s87_s20  ;;  %s552_s30 = scalar_lea.hbm %s724_s25, 8192 }
  0x16   : > { %p553_p13 = scmp.ne.s32.totalorder %s724_s25, %s552_s30  ;;  %p554_p0 = pneg %p728_p12 }
  0x17   : > { %s557_s4 = scalar_lea.hbm %s953_s0, 32768  ;;  %p558_p3 = scmp.lt.s32.totalorder %s724_s25, %s953_s0 }
  0x18   : > { %p555_p1 = pnand %p554_p0, %p553_p13  ;;  %p559_p4 = scmp.lt.s32.totalorder %s557_s4, %s552_s30 }
  0x1a   : > { %p556_p2 = pneg %p555_p1  ;;  %p560_p5 = por %p559_p4, %p558_p3 }
  0x1c   : > { %p561_p7 = pnand %p560_p5, %p556_p2 }
  0x1e   : > { %564 = shalt.err (!%p561_p7)
}
  0x1f   : > { %s565_s13 = scalar_lea.vmem %s732_s27, 8192  ;;  %s646_s14 = smov [#allocation2]  }
  0x20   : > { %p566_p8 = scmp.ne.s32.totalorder %s732_s27, %s565_s13  ;;  %s570_s16 = sshll.u32 %s646_s14, 4  ;;  %s571_s16 = int_to_ptr.vmem [resolvable:$false] %s570_s16 }
  0x21   : > { %s572_s20 = scalar_lea.vmem %s571_s16, 16384  ;;  %p573_p1 = scmp.lt.s32.totalorder %s732_s27, %s571_s16 }
  0x22   : > { %p568_p9 = pnand %p566_p8, %p554_p0  ;;  %p574_p11 = scmp.lt.s32.totalorder %s572_s20, %s565_s13 }
  0x24   : > { %p569_p13 = pneg %p568_p9  ;;  %p575_p10 = por %p574_p11, %p573_p1 }
  0x26   : > { %p576_p6 = pnand %p575_p10, %p569_p13 }
  0x28   : > { %579 = shalt.err (!%p576_p6)
}
  0x29   : > { %s647_s21 = smov 1024   ;;  %s648_s22 = smov 64  }
  0x2a   : > { %509 = dma.hbm_to_vmem [thread:$0]  (!%p728_p12), %s724_s25, 8192, %s732_s27, %s734_s29, %s647_s21, %s647_s21, %s648_s22  }
  0x2b   : > { %p489_p0 = scmp.ge.s32.totalorder %s644_s9, 1  ;;  %p107_p2 = scmp.lt.s32.totalorder %s644_s9, 5 }
  0x2d   : > { %p108_p3 = pnand %p489_p0, %p107_p2 }
  0x2e   : > { %s758_s23 = sand.u32 (!%p108_p3), 1, %s636_s7   ;;  %p962_p6 = scmp.ne.s32.totalorder (!%p108_p3), %s958_s17, 0 }
  0x2f   : > { %111 = sbr.rel (%p108_p3) target bundleno = 118 (0x76), region = 24  ;;  %s490_s24 = sshll.u32 (!%p108_p3), %s758_s23, 9 }
  0x30   : > { %s114_s26 = scalar_lea.sflag (!%p108_p3), [#allocation3], %s758_s23  ;;  %s764_s30 = scalar_lea.vmem (!%p108_p3), [#allocation2], %s490_s24 }
  0x34   : > { %623 = dma.done.wait (%p962_p6), %s114_s26, 8192  }
  0x35   : > { %625 = vsyncadd (%p962_p6), %s114_s26, 4294959104  ;;  %v138_v0 = vld [vmem:[%s764_s30] sm:$0xff]  ;;  %v139_v1 = vld [vmem:[%s764_s30 + $0x8] sm:$0xff]  ;;  %s501_s25 = sshll.u32 %s683_s10, 13  ;;  %s786_s17 = scalar_lea.vmem [#allocation5], %s490_s24 }
  0x36   : > { %v140_v2 = vld [vmem:[%s764_s30 + $0x10] sm:$0xff]  ;;  %v202_v3 = vmax.f32 %v138_v0, 0.0  ;;  %v203_v4 = vmax.f32 %v139_v1, 0.0  ;;  %v141_v6 = vld [vmem:[%s764_s30 + $0x18] sm:$0xff]  ;;  %v142_v7 = vld [vmem:[%s764_s30 + $0x20] sm:$0xff]  ;;  %s409_s27 = sshll.u32 %s786_s17, 4  ;;  %s904_s2 = scalar_lea.hbm %s954_s1, %s501_s25  ;;  %s906_s27 = int_to_ptr.vmem [resolvable:$true] %s409_s27 }
  0x37   : > { %v204_v5 = vmax.f32 %v140_v2, 0.0  ;;  %v143_v8 = vld [vmem:[%s764_s30 + $0x28] sm:$0xff]  ;;  %v205_v9 = vmax.f32 %v141_v6, 0.0  ;;  %v206_v10 = vmax.f32 %v142_v7, 0.0  ;;  %v144_v12 = vld [vmem:[%s764_s30 + $0x30] sm:$0xff]  ;;  %v145_v13 = vld [vmem:[%s764_s30 + $0x38] sm:$0xff] }
  0x38   : > { %v207_v11 = vmax.f32 %v143_v8, 0.0  ;;  %v146_v14 = vld [vmem:[%s764_s30 + $0x40] sm:$0xff]  ;;  %v266_v15 = vmin.f32 %v202_v3, 255.0  ;;  %v267_v16 = vmin.f32 %v203_v4, 255.0  ;;  %v208_v18 = vmax.f32 %v144_v12, 0.0  ;;  %v147_v19 = vld [vmem:[%s764_s30 + $0x48] sm:$0xff] }
  0x39   : > { %v268_v17 = vmin.f32 %v204_v5, 255.0  ;;  %v148_v20 = vld [vmem:[%s764_s30 + $0x50] sm:$0xff]  ;;  %v269_v21 = vmin.f32 %v205_v9, 255.0  ;;  %v270_v22 = vmin.f32 %v206_v10, 255.0  ;;  %v209_v24 = vmax.f32 %v145_v13, 0.0  ;;  %v149_v25 = vld [vmem:[%s764_s30 + $0x58] sm:$0xff] }
  0x3a   : > { %v271_v23 = vmin.f32 %v207_v11, 255.0  ;;  %v150_v26 = vld [vmem:[%s764_s30 + $0x60] sm:$0xff]  ;;  %330 = vst [vmem:[%s786_s17] sm:$0xff] %v266_v15  ;;  %331 = vst [vmem:[%s786_s17 + $0x8] sm:$0xff] %v267_v16  ;;  %v272_v27 = vmin.f32 %v208_v18, 255.0  ;;  %v210_v28 = vmax.f32 %v146_v14, 0.0  ;;  %v211_v29 = vmax.f32 %v147_v19, 0.0 }
  0x3b   : > { %332 = vst [vmem:[%s786_s17 + $0x10] sm:$0xff] %v268_v17  ;;  %v212_v30 = vmax.f32 %v148_v20, 0.0  ;;  %v151_v31 = vld [vmem:[%s764_s30 + $0x68] sm:$0xff]  ;;  %v152_v32 = vld [vmem:[%s764_s30 + $0x70] sm:$0xff]  ;;  %333 = vst [vmem:[%s786_s17 + $0x18] sm:$0xff] %v269_v21  ;;  %v273_v33 = vmin.f32 %v209_v24, 255.0 }
  0x3c   : > { %334 = vst [vmem:[%s786_s17 + $0x20] sm:$0xff] %v270_v22  ;;  %335 = vst [vmem:[%s786_s17 + $0x28] sm:$0xff] %v271_v23  ;;  %v213_v34 = vmax.f32 %v149_v25, 0.0  ;;  %v214_v35 = vmax.f32 %v150_v26, 0.0  ;;  %v215_v36 = vmax.f32 %v151_v31, 0.0  ;;  %v153_v37 = vld [vmem:[%s764_s30 + $0x78] sm:$0xff] }
  0x3d   : > { %v154_v38 = vld [vmem:[%s764_s30 + $0x80] sm:$0xff]  ;;  %336 = vst [vmem:[%s786_s17 + $0x30] sm:$0xff] %v272_v27  ;;  %v274_v39 = vmin.f32 %v210_v28, 255.0  ;;  %v275_v40 = vmin.f32 %v211_v29, 255.0  ;;  %v276_v41 = vmin.f32 %v212_v30, 255.0  ;;  %v216_v42 = vmax.f32 %v152_v32, 0.0 }
  0x3e   : > { %v155_v43 = vld [vmem:[%s764_s30 + $0x88] sm:$0xff]  ;;  %v156_v44 = vld [vmem:[%s764_s30 + $0x90] sm:$0xff]  ;;  %337 = vst [vmem:[%s786_s17 + $0x38] sm:$0xff] %v273_v33  ;;  %v277_v45 = vmin.f32 %v213_v34, 255.0  ;;  %v278_v46 = vmin.f32 %v214_v35, 255.0  ;;  %v279_v47 = vmin.f32 %v215_v36, 255.0 }
  0x3f   : > { %v217_v48 = vmax.f32 %v153_v37, 0.0  ;;  %v157_v49 = vld [vmem:[%s764_s30 + $0x98] sm:$0xff]  ;;  %v158_v50 = vld [vmem:[%s764_s30 + $0xa0] sm:$0xff]  ;;  %338 = vst [vmem:[%s786_s17 + $0x40] sm:$0xff] %v274_v39  ;;  %339 = vst [vmem:[%s786_s17 + $0x48] sm:$0xff] %v275_v40  ;;  %v280_v51 = vmin.f32 %v216_v42, 255.0 }
  0x40   : > { %340 = vst [vmem:[%s786_s17 + $0x50] sm:$0xff] %v276_v41  ;;  %v218_v52 = vmax.f32 %v154_v38, 0.0  ;;  %v219_v53 = vmax.f32 %v155_v43, 0.0  ;;  %v220_v54 = vmax.f32 %v156_v44, 0.0  ;;  %v159_v55 = vld [vmem:[%s764_s30 + $0xa8] sm:$0xff]  ;;  %v160_v56 = vld [vmem:[%s764_s30 + $0xb0] sm:$0xff] }
  0x41   : > { %341 = vst [vmem:[%s786_s17 + $0x58] sm:$0xff] %v277_v45  ;;  %342 = vst [vmem:[%s786_s17 + $0x60] sm:$0xff] %v278_v46  ;;  %v281_v57 = vmin.f32 %v217_v48, 255.0  ;;  %v221_v58 = vmax.f32 %v157_v49, 0.0  ;;  %v222_v59 = vmax.f32 %v158_v50, 0.0  ;;  %v223_v60 = vmax.f32 %v159_v55, 0.0 }
  0x42   : > { %343 = vst [vmem:[%s786_s17 + $0x68] sm:$0xff] %v279_v47  ;;  %v161_v61 = vld [vmem:[%s764_s30 + $0xb8] sm:$0xff]  ;;  %v162_v62 = vld [vmem:[%s764_s30 + $0xc0] sm:$0xff]  ;;  %344 = vst [vmem:[%s786_s17 + $0x70] sm:$0xff] %v280_v51  ;;  %v282_v63 = vmin.f32 %v218_v52, 255.0  ;;  %v283_v0 = vmin.f32 %v219_v53, 255.0 }
  0x43   : > { %v284_v1 = vmin.f32 %v220_v54, 255.0  ;;  %v224_v2 = vmax.f32 %v160_v56, 0.0  ;;  %v163_v3 = vld [vmem:[%s764_s30 + $0xc8] sm:$0xff]  ;;  %v164_v4 = vld [vmem:[%s764_s30 + $0xd0] sm:$0xff]  ;;  %345 = vst [vmem:[%s786_s17 + $0x78] sm:$0xff] %v281_v57  ;;  %v285_v5 = vmin.f32 %v221_v58, 255.0 }
  0x44   : > { %v286_v6 = vmin.f32 %v222_v59, 255.0  ;;  %v287_v7 = vmin.f32 %v223_v60, 255.0  ;;  %v225_v8 = vmax.f32 %v161_v61, 0.0  ;;  %v165_v9 = vld [vmem:[%s764_s30 + $0xd8] sm:$0xff]  ;;  %v166_v10 = vld [vmem:[%s764_s30 + $0xe0] sm:$0xff]  ;;  %346 = vst [vmem:[%s786_s17 + $0x80] sm:$0xff] %v282_v63 }
  0x45   : > { %347 = vst [vmem:[%s786_s17 + $0x88] sm:$0xff] %v283_v0  ;;  %348 = vst [vmem:[%s786_s17 + $0x90] sm:$0xff] %v284_v1  ;;  %v288_v11 = vmin.f32 %v224_v2, 255.0  ;;  %v226_v12 = vmax.f32 %v162_v62, 0.0  ;;  %v227_v13 = vmax.f32 %v163_v3, 0.0  ;;  %v228_v14 = vmax.f32 %v164_v4, 0.0 }
  0x46   : > { %v167_v15 = vld [vmem:[%s764_s30 + $0xe8] sm:$0xff]  ;;  %v168_v16 = vld [vmem:[%s764_s30 + $0xf0] sm:$0xff]  ;;  %349 = vst [vmem:[%s786_s17 + $0x98] sm:$0xff] %v285_v5  ;;  %350 = vst [vmem:[%s786_s17 + $0xa0] sm:$0xff] %v286_v6  ;;  %v289_v17 = vmin.f32 %v225_v8, 255.0  ;;  %v229_v18 = vmax.f32 %v165_v9, 0.0 }
  0x47   : > { %351 = vst [vmem:[%s786_s17 + $0xa8] sm:$0xff] %v287_v7  ;;  %v230_v19 = vmax.f32 %v166_v10, 0.0  ;;  %v231_v20 = vmax.f32 %v167_v15, 0.0  ;;  %v169_v21 = vld [vmem:[%s764_s30 + $0xf8] sm:$0xff]  ;;  %v170_v22 = vld [vmem:[%s764_s30 + $0x100] sm:$0xff]  ;;  %352 = vst [vmem:[%s786_s17 + $0xb0] sm:$0xff] %v288_v11 }
  0x48   : > { %v290_v23 = vmin.f32 %v226_v12, 255.0  ;;  %v291_v24 = vmin.f32 %v227_v13, 255.0  ;;  %v292_v25 = vmin.f32 %v228_v14, 255.0  ;;  %v232_v26 = vmax.f32 %v168_v16, 0.0  ;;  %v171_v27 = vld [vmem:[%s764_s30 + $0x108] sm:$0xff]  ;;  %v172_v28 = vld [vmem:[%s764_s30 + $0x110] sm:$0xff] }
  0x49   : > { %353 = vst [vmem:[%s786_s17 + $0xb8] sm:$0xff] %v289_v17  ;;  %v293_v29 = vmin.f32 %v229_v18, 255.0  ;;  %v294_v30 = vmin.f32 %v230_v19, 255.0  ;;  %v295_v31 = vmin.f32 %v231_v20, 255.0  ;;  %v233_v32 = vmax.f32 %v169_v21, 0.0  ;;  %v173_v33 = vld [vmem:[%s764_s30 + $0x118] sm:$0xff] }
  0x4a   : > { %v174_v34 = vld [vmem:[%s764_s30 + $0x120] sm:$0xff]  ;;  %354 = vst [vmem:[%s786_s17 + $0xc0] sm:$0xff] %v290_v23  ;;  %355 = vst [vmem:[%s786_s17 + $0xc8] sm:$0xff] %v291_v24  ;;  %v296_v35 = vmin.f32 %v232_v26, 255.0  ;;  %v234_v36 = vmax.f32 %v170_v22, 0.0  ;;  %v235_v37 = vmax.f32 %v171_v27, 0.0 }
  0x4b   : > { %356 = vst [vmem:[%s786_s17 + $0xd0] sm:$0xff] %v292_v25  ;;  %v236_v38 = vmax.f32 %v172_v28, 0.0  ;;  %v175_v39 = vld [vmem:[%s764_s30 + $0x128] sm:$0xff]  ;;  %v176_v40 = vld [vmem:[%s764_s30 + $0x130] sm:$0xff]  ;;  %357 = vst [vmem:[%s786_s17 + $0xd8] sm:$0xff] %v293_v29  ;;  %v297_v41 = vmin.f32 %v233_v32, 255.0 }
  0x4c   : > { %358 = vst [vmem:[%s786_s17 + $0xe0] sm:$0xff] %v294_v30  ;;  %359 = vst [vmem:[%s786_s17 + $0xe8] sm:$0xff] %v295_v31  ;;  %v237_v42 = vmax.f32 %v173_v33, 0.0  ;;  %v238_v43 = vmax.f32 %v174_v34, 0.0  ;;  %v239_v44 = vmax.f32 %v175_v39, 0.0  ;;  %v177_v45 = vld [vmem:[%s764_s30 + $0x138] sm:$0xff] }
  0x4d   : > { %v178_v46 = vld [vmem:[%s764_s30 + $0x140] sm:$0xff]  ;;  %360 = vst [vmem:[%s786_s17 + $0xf0] sm:$0xff] %v296_v35  ;;  %v298_v47 = vmin.f32 %v234_v36, 255.0  ;;  %v299_v48 = vmin.f32 %v235_v37, 255.0  ;;  %v300_v49 = vmin.f32 %v236_v38, 255.0  ;;  %v240_v50 = vmax.f32 %v176_v40, 0.0 }
  0x4e   : > { %v179_v51 = vld [vmem:[%s764_s30 + $0x148] sm:$0xff]  ;;  %v180_v52 = vld [vmem:[%s764_s30 + $0x150] sm:$0xff]  ;;  %361 = vst [vmem:[%s786_s17 + $0xf8] sm:$0xff] %v297_v41  ;;  %v301_v53 = vmin.f32 %v237_v42, 255.0  ;;  %v302_v54 = vmin.f32 %v238_v43, 255.0  ;;  %v303_v55 = vmin.f32 %v239_v44, 255.0 }
  0x4f   : > { %v241_v56 = vmax.f32 %v177_v45, 0.0  ;;  %v181_v57 = vld [vmem:[%s764_s30 + $0x158] sm:$0xff]  ;;  %v182_v58 = vld [vmem:[%s764_s30 + $0x160] sm:$0xff]  ;;  %362 = vst [vmem:[%s786_s17 + $0x100] sm:$0xff] %v298_v47  ;;  %363 = vst [vmem:[%s786_s17 + $0x108] sm:$0xff] %v299_v48  ;;  %v304_v59 = vmin.f32 %v240_v50, 255.0 }
  0x50   : > { %364 = vst [vmem:[%s786_s17 + $0x110] sm:$0xff] %v300_v49  ;;  %v242_v60 = vmax.f32 %v178_v46, 0.0  ;;  %v243_v61 = vmax.f32 %v179_v51, 0.0  ;;  %v244_v62 = vmax.f32 %v180_v52, 0.0  ;;  %v183_v63 = vld [vmem:[%s764_s30 + $0x168] sm:$0xff]  ;;  %v184_v0 = vld [vmem:[%s764_s30 + $0x170] sm:$0xff] }
  0x51   : > { %365 = vst [vmem:[%s786_s17 + $0x118] sm:$0xff] %v301_v53  ;;  %366 = vst [vmem:[%s786_s17 + $0x120] sm:$0xff] %v302_v54  ;;  %v305_v1 = vmin.f32 %v241_v56, 255.0  ;;  %v245_v2 = vmax.f32 %v181_v57, 0.0  ;;  %v246_v3 = vmax.f32 %v182_v58, 0.0  ;;  %v247_v4 = vmax.f32 %v183_v63, 0.0 }
  0x52   : > { %367 = vst [vmem:[%s786_s17 + $0x128] sm:$0xff] %v303_v55  ;;  %v185_v5 = vld [vmem:[%s764_s30 + $0x178] sm:$0xff]  ;;  %v186_v6 = vld [vmem:[%s764_s30 + $0x180] sm:$0xff]  ;;  %368 = vst [vmem:[%s786_s17 + $0x130] sm:$0xff] %v304_v59  ;;  %v306_v7 = vmin.f32 %v242_v60, 255.0  ;;  %v307_v8 = vmin.f32 %v243_v61, 255.0 }
  0x53   : > { %v308_v9 = vmin.f32 %v244_v62, 255.0  ;;  %v248_v10 = vmax.f32 %v184_v0, 0.0  ;;  %v187_v11 = vld [vmem:[%s764_s30 + $0x188] sm:$0xff]  ;;  %v188_v12 = vld [vmem:[%s764_s30 + $0x190] sm:$0xff]  ;;  %369 = vst [vmem:[%s786_s17 + $0x138] sm:$0xff] %v305_v1  ;;  %v309_v13 = vmin.f32 %v245_v2, 255.0 }
  0x54   : > { %v310_v14 = vmin.f32 %v246_v3, 255.0  ;;  %v311_v15 = vmin.f32 %v247_v4, 255.0  ;;  %v249_v16 = vmax.f32 %v185_v5, 0.0  ;;  %v189_v17 = vld [vmem:[%s764_s30 + $0x198] sm:$0xff]  ;;  %v190_v18 = vld [vmem:[%s764_s30 + $0x1a0] sm:$0xff]  ;;  %370 = vst [vmem:[%s786_s17 + $0x140] sm:$0xff] %v306_v7 }
  0x55   : > { %371 = vst [vmem:[%s786_s17 + $0x148] sm:$0xff] %v307_v8  ;;  %372 = vst [vmem:[%s786_s17 + $0x150] sm:$0xff] %v308_v9  ;;  %v312_v19 = vmin.f32 %v248_v10, 255.0  ;;  %v250_v20 = vmax.f32 %v186_v6, 0.0  ;;  %v251_v21 = vmax.f32 %v187_v11, 0.0  ;;  %v252_v22 = vmax.f32 %v188_v12, 0.0 }
  0x56   : > { %v191_v23 = vld [vmem:[%s764_s30 + $0x1a8] sm:$0xff]  ;;  %v192_v24 = vld [vmem:[%s764_s30 + $0x1b0] sm:$0xff]  ;;  %373 = vst [vmem:[%s786_s17 + $0x158] sm:$0xff] %v309_v13  ;;  %374 = vst [vmem:[%s786_s17 + $0x160] sm:$0xff] %v310_v14  ;;  %v313_v25 = vmin.f32 %v249_v16, 255.0  ;;  %v253_v26 = vmax.f32 %v189_v17, 0.0 }
  0x57   : > { %375 = vst [vmem:[%s786_s17 + $0x168] sm:$0xff] %v311_v15  ;;  %v254_v27 = vmax.f32 %v190_v18, 0.0  ;;  %v255_v28 = vmax.f32 %v191_v23, 0.0  ;;  %v193_v29 = vld [vmem:[%s764_s30 + $0x1b8] sm:$0xff]  ;;  %v194_v30 = vld [vmem:[%s764_s30 + $0x1c0] sm:$0xff]  ;;  %376 = vst [vmem:[%s786_s17 + $0x170] sm:$0xff] %v312_v19 }
  0x58   : > { %v314_v31 = vmin.f32 %v250_v20, 255.0  ;;  %v315_v32 = vmin.f32 %v251_v21, 255.0  ;;  %v316_v33 = vmin.f32 %v252_v22, 255.0  ;;  %v256_v34 = vmax.f32 %v192_v24, 0.0  ;;  %v195_v35 = vld [vmem:[%s764_s30 + $0x1c8] sm:$0xff]  ;;  %v196_v36 = vld [vmem:[%s764_s30 + $0x1d0] sm:$0xff] }
  0x59   : > { %377 = vst [vmem:[%s786_s17 + $0x178] sm:$0xff] %v313_v25  ;;  %v317_v37 = vmin.f32 %v253_v26, 255.0  ;;  %v318_v38 = vmin.f32 %v254_v27, 255.0  ;;  %v319_v39 = vmin.f32 %v255_v28, 255.0  ;;  %v257_v40 = vmax.f32 %v193_v29, 0.0  ;;  %v197_v41 = vld [vmem:[%s764_s30 + $0x1d8] sm:$0xff] }
  0x5a   : > { %v198_v42 = vld [vmem:[%s764_s30 + $0x1e0] sm:$0xff]  ;;  %378 = vst [vmem:[%s786_s17 + $0x180] sm:$0xff] %v314_v31  ;;  %379 = vst [vmem:[%s786_s17 + $0x188] sm:$0xff] %v315_v32  ;;  %v320_v43 = vmin.f32 %v256_v34, 255.0  ;;  %v258_v44 = vmax.f32 %v194_v30, 0.0  ;;  %v259_v45 = vmax.f32 %v195_v35, 0.0 }
  0x5b   : > { %380 = vst [vmem:[%s786_s17 + $0x190] sm:$0xff] %v316_v33  ;;  %v260_v46 = vmax.f32 %v196_v36, 0.0  ;;  %v199_v47 = vld [vmem:[%s764_s30 + $0x1e8] sm:$0xff]  ;;  %v200_v48 = vld [vmem:[%s764_s30 + $0x1f0] sm:$0xff]  ;;  %381 = vst [vmem:[%s786_s17 + $0x198] sm:$0xff] %v317_v37  ;;  %v321_v49 = vmin.f32 %v257_v40, 255.0 }
  0x5c   : > { %382 = vst [vmem:[%s786_s17 + $0x1a0] sm:$0xff] %v318_v38  ;;  %383 = vst [vmem:[%s786_s17 + $0x1a8] sm:$0xff] %v319_v39  ;;  %v261_v50 = vmax.f32 %v197_v41, 0.0  ;;  %v262_v51 = vmax.f32 %v198_v42, 0.0  ;;  %v263_v52 = vmax.f32 %v199_v47, 0.0  ;;  %v201_v53 = vld [vmem:[%s764_s30 + $0x1f8] sm:$0xff] }
  0x5d   : > { %384 = vst [vmem:[%s786_s17 + $0x1b0] sm:$0xff] %v320_v43  ;;  %v322_v54 = vmin.f32 %v258_v44, 255.0  ;;  %v323_v55 = vmin.f32 %v259_v45, 255.0  ;;  %v324_v56 = vmin.f32 %v260_v46, 255.0  ;;  %v264_v57 = vmax.f32 %v200_v48, 0.0  ;;  %385 = vst [vmem:[%s786_s17 + $0x1b8] sm:$0xff] %v321_v49 }
  0x5e   : > { %v325_v58 = vmin.f32 %v261_v50, 255.0  ;;  %v326_v59 = vmin.f32 %v262_v51, 255.0  ;;  %v327_v60 = vmin.f32 %v263_v52, 255.0  ;;  %v265_v61 = vmax.f32 %v201_v53, 0.0  ;;  %s395_s3 = scalar_lea.sflag [#allocation4], %s758_s23  ;;  %s580_s4 = scalar_lea.vmem %s906_s27, 8192 }
  0x5f   : > { %386 = vst [vmem:[%s786_s17 + $0x1c0] sm:$0xff] %v322_v54  ;;  %387 = vst [vmem:[%s786_s17 + $0x1c8] sm:$0xff] %v323_v55  ;;  %v328_v62 = vmin.f32 %v264_v57, 255.0  ;;  %p581_p10 = scmp.ne.s32.totalorder %s906_s27, %s580_s4  ;;  %p963_p11 = scmp.ne.s32.totalorder %s959_s18, 0 }
  0x60   : > { %388 = vst [vmem:[%s786_s17 + $0x1d0] sm:$0xff] %v324_v56  ;;  %389 = vst [vmem:[%s786_s17 + $0x1d8] sm:$0xff] %v325_v58  ;;  %v329_v63 = vmin.f32 %v265_v61, 255.0  ;;  %s649_s10 = smov [#allocation5]  }
  0x61   : > { %390 = vst [vmem:[%s786_s17 + $0x1e0] sm:$0xff] %v326_v59  ;;  %391 = vst [vmem:[%s786_s17 + $0x1e8] sm:$0xff] %v327_v60  ;;  %p582_p12 = pnand %p581_p10, %p963_p11  ;;  %s584_s5 = sshll.u32 %s649_s10, 4  ;;  %s585_s5 = int_to_ptr.vmem [resolvable:$false] %s584_s5 }
  0x62   : > { %392 = vst [vmem:[%s786_s17 + $0x1f0] sm:$0xff] %v328_v62  ;;  %393 = vst [vmem:[%s786_s17 + $0x1f8] sm:$0xff] %v329_v63  ;;  %s586_s11 = scalar_lea.vmem %s585_s5, 16384  ;;  %p587_p5 = scmp.lt.s32.totalorder %s906_s27, %s585_s5 }
  0x63   : > { %p583_p4 = pneg %p582_p12  ;;  %p588_p7 = scmp.lt.s32.totalorder %s586_s11, %s580_s4 }
  0x65   : > { %p589_p8 = por %p588_p7, %p587_p5 }
  0x67   : > { %p590_p9 = pnand %p589_p8, %p583_p4 }
  0x69   : > { %593 = shalt.err (!%p590_p9)
}
  0x6a   : > { %s594_s13 = scalar_lea.hbm %s904_s2, 8192  ;;  %s598_s20 = scalar_lea.hbm %s954_s1, 32768 }
  0x6b   : > { %p595_p13 = scmp.ne.s32.totalorder %s904_s2, %s594_s13  ;;  %p599_p2 = scmp.lt.s32.totalorder %s904_s2, %s954_s1 }
  0x6c   : > { %p600_p3 = scmp.lt.s32.totalorder %s598_s20, %s594_s13 }
  0x6d   : > { %p596_p1 = pnand %p595_p13, %p963_p11 }
  0x6e   : > { %p601_p6 = por %p600_p3, %p599_p2 }
  0x6f   : > { %p597_p0 = pneg %p596_p1 }
  0x71   : > { %p602_p10 = pnand %p601_p6, %p597_p0 }
  0x73   : > { %605 = shalt.err (!%p602_p10)
}
  0x74   : > { %s650_s24 = smov 1024   ;;  %s651_s26 = smov 64  }
  0x75   : > { %504 = dma.vmem_to_hbm [thread:$0]  (%p963_p11), %s906_s27, 8192, %s904_s2, %s395_s3, %s650_s24, %s650_s24, %s651_s26  }
  0x76 PF: > { %p515_p12 = scmp.ge.s32.totalorder %s644_s9, 2  ;;  %s424_s30 = sand.u32 1, %s632_s6  }
  0x77   : > { %p964_p4 = scmp.ne.s32.totalorder %s960_s19, 0  ;;  %s425_s25 = scalar_lea.sflag [#allocation4], %s424_s30 }
  0x79   : > { %p511_p5 = pnand %p515_p12, %p964_p4 }
  0x7b   : > { %p512_p7 = pneg %p511_p5 }
  0x7d   : > { %627 = dma.done.wait (%p512_p7), %s425_s25, 8192  }
  0x7e   : > { %629 = vsyncadd (%p512_p7), %s425_s25, 4294959104  ;;  %p14_p8 = scmp.ge.s32.totalorder %s687_s12, 6   ;;  %s965_s6 = smov %s636_s7 }
  0x7f   : > { %s966_s7 = smov %s640_s8  ;;  %s967_s8 = smov %s699_s15 }
  0x80   : > { %s968_s9 = smov %s687_s12  ;;  %16 = sbr.rel (!%p14_p8) target bundleno = 5 (0x5), region = 69 }
  0x85   :  { %430 = vsyncpa [#allocation3], 1 }
  0x86   :  { %432 = vsyncpa [#allocation3 + $0x1], 1 }
  0x87   :  { %433 = vsyncpa [#allocation4], 1 }
  0x88   :  { %435 = vsyncpa [#allocation4 + $0x1], 1 }

</bundles_post_ra>
